<compile_context>
chip_gen: v5e
topology: v5e:2x2
jax: 0.10.0
libtpu: 0.0.40
codegen_flags: <defaults>
</compile_context>

<pallas_src>
import functools
import math

import jax
import jax.numpy as jnp
from jax import lax
from jax.experimental import pallas as pl
from jax.experimental.pallas import tpu as pltpu


# ---------------------------------------------------------------------------
# Kernel
# ---------------------------------------------------------------------------
def _pool_cheb_bn2_kernel(x_ref, m1_ref, m2_ref, lap_ref,
                          w1_ref, b1_ref, g1_ref, be1_ref,
                          w2_ref, b2_ref, g2_ref, be2_ref,
                          o_ref, *, B, K, bn_eps):
    """Fused pooling -> (concrete dropout + ChebConv + BN + ReLU) x 2.

    One grid step == one Monte-Carlo dropout sample (the grid axis is
    "parallel").  Operands with constant index_maps (x, L, weights, BN params)
    stay VMEM-resident across samples; only the dropout masks change.

    Layouts (channel-major rows = (batch, channel), vertices last = lane-dense):
      x_ref  : (pool, B*Cin, V)  f32   x_ref[j] holds vertices {pool*v + j}
      m*_ref : (B*C, V)          f32   precomputed concrete-dropout retain mask
      lap_ref: (V, V)            bf16  dense symmetric rescaled Laplacian
      w*_ref : (B*Cw, K*B*C)     bf16  fused block-diag (per-batch) Cheb weights
      b/g/be : (Cw, 1)           f32   conv bias, BN gamma, BN beta
      o_ref  : (B*Cout, V)       f32
    """
    pool = x_ref.shape[0]

    # ---- pooling (HealpixMaxPool, kernel_size=pool, consecutive vertices) ---
    # TODO(synk): the PyTorch module accepts an arbitrary `pooling` nn.Module;
    #             Healpix-style max pooling (ratio `pool`) is hard-coded here.
    x = x_ref[0]
    for j in range(1, pool):
        x = jnp.maximum(x, x_ref[j])                       # (B*Cin, V) f32

    lap = lap_ref[...]                                     # bf16, VMEM-resident

    def cheb_bn_relu(xin, retain, wT_ref, b_ref, g_ref, be_ref):
        """One block: concrete dropout -> ChebConv -> BatchNorm1d -> ReLU."""
        rows, V = xin.shape
        Cw = wT_ref.shape[0] // B                          # output channels

        # -- concrete dropout: mask precomputed in the wrapper -> one VPU mul.
        xd = xin * retain                                  # (B*C, V) f32

        # -- Chebyshev recursion T_k = 2 L T_{k-1} - T_{k-2}.
        #    bf16 MXU inputs, f32 accumulation; N = V stays lane-dense,
        #    batch+channels fold into M.  All K terms are staged so the weight
        #    application is a single matmul with contraction K*B*C.
        def lap_apply(t):
            # T @ L == (L @ T^T)^T because L is symmetric -> one 2D MXU matmul.
            return jnp.dot(t.astype(jnp.bfloat16), lap,
                           preferred_element_type=jnp.float32)

        t_prev = xd
        terms = [t_prev]
        if K > 1:
            t_cur = lap_apply(t_prev)                      # T_1 = L x
            terms.append(t_cur)
            for _ in range(2, K):
                t_nxt = 2.0 * lap_apply(t_cur) - t_prev
                terms.append(t_nxt)
                t_prev, t_cur = t_cur, t_nxt
        t_stack = jnp.concatenate(terms, axis=0)           # (K*B*C, V)

        # -- fused per-k weight matmul: (B*Cw, K*B*C) @ (K*B*C, V) -> (B*Cw, V)
        # TODO(synk): the block-diagonal kron(I_B, W_k) weight costs O(B^2);
        #             fine for small B, rework the weight step if B grows.
        y = jnp.dot(wT_ref[...], t_stack.astype(jnp.bfloat16),
                    preferred_element_type=jnp.float32)

        # -- conv bias + BatchNorm1d (training-mode batch stats) + ReLU -------
        # Vectorized: (B, Cw, V) view (Cw is a multiple of 8 -> aligned sublane
        # split), two-pass mean-shifted variance in f32, whole-slab epilogue.
        y3 = y.reshape(B, Cw, V) + b_ref[...][None]        # (B, Cw, V)
        inv_n = 1.0 / float(B * V)
        row_sum = jnp.sum(y3, axis=2, keepdims=True)       # (B, Cw, 1)
        mean = jnp.sum(row_sum, axis=0, keepdims=True) * inv_n     # (1, Cw, 1)
        cen = y3 - mean
        sq_sum = jnp.sum(cen * cen, axis=2, keepdims=True)
        var = jnp.sum(sq_sum, axis=0, keepdims=True) * inv_n       # biased var
        scale = g_ref[...][None] * lax.rsqrt(var + bn_eps)
        out3 = jnp.maximum(cen * scale + be_ref[...][None], 0.0)
        return out3.reshape(B * Cw, V)

    h = cheb_bn_relu(x, m1_ref[...], w1_ref, b1_ref, g1_ref, be1_ref)
    y = cheb_bn_relu(h, m2_ref[...], w2_ref, b2_ref, g2_ref, be2_ref)
    o_ref[...] = y.astype(o_ref.dtype)


# ---------------------------------------------------------------------------
# Wrapper-side helpers (cheap XLA ops, done once outside the kernel)
# ---------------------------------------------------------------------------
def _concrete_retain_mask(u, p, *, temp=0.1, eps=1e-7):
    """Concrete-dropout retain factor (1 - z) / (1 - p); p is a static float."""
    # TODO(synk): PyTorch ConcreteDropout learns p = sigmoid(p_logit) and adds
    #             a regularizer; here p is frozen (pure forward pass).
    logit_p = math.log(p) - math.log(1.0 - p)
    z = jax.nn.sigmoid(
        (logit_p + jnp.log(u + eps) - jnp.log(1.0 - u + eps)) / temp)
    return (1.0 - z) * (1.0 / (1.0 - p))


def _fused_block_diag_wT(w, B):
    """w: (K, Cin, Cout) -> (B*Cout, K*B*Cin): kron(I_B, W_k)^T fused over k.

    Row index = b*Cout + cout, column index = k*(B*Cin) + b*Cin + cin, matching
    the in-kernel stacking of the Chebyshev terms.
    """
    Kk, Cin, Cout = w.shape
    eye = jnp.eye(B, dtype=w.dtype)
    wt = jnp.einsum('pq,kio->pokqi', eye, w)          # (B, Cout, K, B, Cin)
    return wt.reshape(B * Cout, Kk * B * Cin)


def bayesian_spherical_cheb_bn_pool2(x, lap, params, noise1, noise2, *,
                                     K, pool_size=4, p1=0.1, p2=0.1,
                                     bn_eps=1e-5):
    """Forward of BayesianSphericalChebBNPool2.

    x       : (B, V_in, Cin)       channel-last, PyTorch layout.
    lap     : (V, V)               dense symmetric rescaled Laplacian (post-pool).
    noise1  : (S, B*Cin, V)  or (B*Cin, V)   uniform (0,1) noise, block 1.
    noise2  : (S, B*Cmid, V) or (B*Cmid, V)  uniform (0,1) noise, block 2.
    returns : (S, B, V, Cout) (or (B, V, Cout) if the noise had no sample axis);
              each sample slice equals one stochastic forward of the module.
    """
    B, Vin, Cin = x.shape
    assert Vin % pool_size == 0
    V = Vin // pool_size
    Kk, Cin_w, Cmid = params["w1"].shape
    _, Cmid_w, Cout = params["w2"].shape
    assert Kk == K and Cin_w == Cin and Cmid_w == Cmid
    assert lap.shape == (V, V)

    squeeze_samples = noise1.ndim == 2
    if squeeze_samples:
        noise1, noise2 = noise1[None], noise2[None]
    S = noise1.shape[0]
    assert noise1.shape == (S, B * Cin, V) and noise2.shape == (S, B * Cmid, V)

    # ---- layout plumbing: channel-major rows, vertices last (lane-dense) ----
    x_cv = jnp.transpose(x, (0, 2, 1)).reshape(B * Cin, Vin)
    x_pool = jnp.transpose(x_cv.reshape(B * Cin, V, pool_size), (2, 0, 1))
    x_pool = x_pool.astype(jnp.float32)                   # (pool, B*Cin, V)

    # ---- precompute concrete-dropout retain masks (hoists all log/sigmoid) --
    mask1 = _concrete_retain_mask(noise1, p1)             # (S, B*Cin, V)  f32
    mask2 = _concrete_retain_mask(noise2, p2)             # (S, B*Cmid, V) f32

    # ---- bf16 MXU operands prepared here (half the HBM->VMEM bytes of L) ----
    lap_bf16 = lap.astype(jnp.bfloat16)
    w1T = _fused_block_diag_wT(params["w1"], B).astype(jnp.bfloat16)
    w2T = _fused_block_diag_wT(params["w2"], B).astype(jnp.bfloat16)

    inputs = (x_pool, mask1, mask2, lap_bf16,
              w1T, params["b1"], params["gamma1"], params["beta1"],
              w2T, params["b2"], params["gamma2"], params["beta2"])

    # ---- VMEM budget (resident operands + per-sample streams + temporaries) -
    def _nbytes(a):
        return a.size * a.dtype.itemsize
    resident = (_nbytes(x_pool) + _nbytes(lap_bf16) + _nbytes(w1T) + _nbytes(w2T)
                + sum(_nbytes(params[k]) for k in
                      ("b1", "gamma1", "beta1", "b2", "gamma2", "beta2")))
    per_sample = (_nbytes(mask1) + _nbytes(mask2)) // S + 4 * B * Cout * V
    tmp = 4 * V * B * (2 * K * (Cin + Cmid) + 4 * (Cmid + Cout))
    vmem_budget = int(min(56 * 1024 * 1024,
                          max(32 * 1024 * 1024,
                              resident + 2 * per_sample + 2 * tmp)))

    flops = int(S * (2 * (K - 1) * B * (Cin + Cmid) * V * V
                     + 2 * K * B * B * V * (Cin * Cmid + Cmid * Cout)))
    bytes_accessed = int(sum(_nbytes(a) for a in inputs) + 4 * S * B * Cout * V)

    kernel = functools.partial(_pool_cheb_bn2_kernel, B=B, K=K, bn_eps=bn_eps)

    in_specs = [
        pl.BlockSpec((pool_size, B * Cin, V), lambda s: (0, 0, 0)),   # x (const)
        pl.BlockSpec((None, B * Cin, V), lambda s: (s, 0, 0)),        # mask1
        pl.BlockSpec((None, B * Cmid, V), lambda s: (s, 0, 0)),       # mask2
        pl.BlockSpec((V, V), lambda s: (0, 0)),                       # L (const)
        pl.BlockSpec(w1T.shape, lambda s: (0, 0)),
        pl.BlockSpec(params["b1"].shape, lambda s: (0, 0)),
        pl.BlockSpec(params["gamma1"].shape, lambda s: (0, 0)),
        pl.BlockSpec(params["beta1"].shape, lambda s: (0, 0)),
        pl.BlockSpec(w2T.shape, lambda s: (0, 0)),
        pl.BlockSpec(params["b2"].shape, lambda s: (0, 0)),
        pl.BlockSpec(params["gamma2"].shape, lambda s: (0, 0)),
        pl.BlockSpec(params["beta2"].shape, lambda s: (0, 0)),
    ]

    out2d = pl.pallas_call(
        kernel,
        grid=(S,),
        in_specs=in_specs,
        out_specs=pl.BlockSpec((None, B * Cout, V), lambda s: (s, 0, 0)),
        out_shape=jax.ShapeDtypeStruct((S, B * Cout, V), jnp.float32),
        compiler_params=pltpu.CompilerParams(
            dimension_semantics=("parallel",),       # MC samples -> v7x dual-TC
            vmem_limit_bytes=vmem_budget),
        cost_estimate=pl.CostEstimate(flops=flops,
                                      transcendentals=int(S * (Cmid + Cout)),
                                      bytes_accessed=bytes_accessed),
    )(*inputs)

    # Back to the PyTorch [batch x vertices x channels] convention.
    out = jnp.transpose(out2d.reshape(S, B, Cout, V), (0, 1, 3, 2))
    return out[0] if squeeze_samples else out


# ---------------------------------------------------------------------------
# Pure-JAX f32 reference (same dropout masks), demo params / Laplacian
# ---------------------------------------------------------------------------
def _reference_forward(x, lap, params, retain1, retain2, *, K, pool_size,
                       bn_eps=1e-5):
    B, Vin, Cin = x.shape
    V = Vin // pool_size
    xp = jnp.max(x.reshape(B, V, pool_size, Cin), axis=2)        # HealpixMaxPool
    hi = lax.Precision.HIGHEST

    def block(xin, retain, w, b, gamma, beta):
        Bb, Vv, C = xin.shape
        r = jnp.transpose(retain.reshape(Bb, C, Vv), (0, 2, 1))  # (B, V, C)
        xd = xin * r
        t_prev = xd
        terms = [t_prev]
        Kk = w.shape[0]
        if Kk > 1:
            t_cur = jnp.einsum('uv,bvc->buc', lap, xd, precision=hi)
            terms.append(t_cur)
            for _ in range(2, Kk):
                t_nxt = 2.0 * jnp.einsum('uv,bvc->buc', lap, t_cur,
                                         precision=hi) - t_prev
                terms.append(t_nxt)
                t_prev, t_cur = t_cur, t_nxt
        y = sum(jnp.einsum('bvc,co->bvo', terms[k], w[k], precision=hi)
                for k in range(Kk))
        y = y + b[:, 0][None, None, :]
        mean = jnp.mean(y, axis=(0, 1), keepdims=True)
        var = jnp.mean((y - mean) ** 2, axis=(0, 1), keepdims=True)
        yn = ((y - mean) * lax.rsqrt(var + bn_eps) * gamma[:, 0][None, None, :]
              + beta[:, 0][None, None, :])
        return jnp.maximum(yn, 0.0)

    h = block(xp, retain1, params["w1"], params["b1"],
              params["gamma1"], params["beta1"])
    return block(h, retain2, params["w2"], params["b2"],
                 params["gamma2"], params["beta2"])


def make_ring_laplacian(V):
    """Deterministic rescaled normalized Laplacian of a ring graph (symmetric)."""
    idx = jnp.arange(V)
    A = (jnp.zeros((V, V))
         .at[idx, (idx + 1) % V].set(1.0)
         .at[idx, (idx - 1) % V].set(1.0))
    Lnorm = jnp.eye(V) - 0.5 * A                   # eigenvalues in [0, 2]
    return (Lnorm - jnp.eye(V)).astype(jnp.float32)   # rescaled to [-1, 1]


def init_params(key, Cin, Cmid, Cout, K):
    k1, k2 = jax.random.split(key)
    s1 = math.sqrt(2.0 / (Cin * K))
    s2 = math.sqrt(2.0 / (Cmid * K))
    # NOTE: Chebyshev weights stored per-k as (K, Cin, Cout); loading real
    # PyTorch/PyG ChebConv weights would need a layout permutation.
    return {
        "w1": s1 * jax.random.normal(k1, (K, Cin, Cmid), jnp.float32),
        "b1": jnp.zeros((Cmid, 1), jnp.float32),
        "gamma1": jnp.ones((Cmid, 1), jnp.float32),
        "beta1": jnp.zeros((Cmid, 1), jnp.float32),
        "w2": s2 * jax.random.normal(k2, (K, Cmid, Cout), jnp.float32),
        "b2": jnp.zeros((Cout, 1), jnp.float32),
        "gamma2": jnp.ones((Cout, 1), jnp.float32),
        "beta2": jnp.zeros((Cout, 1), jnp.float32),
    }


if __name__ == "__main__":
    # Small but lane-dense shapes: V = 128 after pooling (multiple of 128),
    # channels multiples of 8, [batch x vertices x channels] convention.
    B, Vin = 2, 512
    pool_size = 4
    V = Vin // pool_size                 # 128
    Cin, Cmid, Cout = 8, 16, 8
    K = 3                                # Chebyshev polynomial degree
    S = 2                                # Monte-Carlo dropout samples (parallel grid axis)
    p1 = p2 = 0.1

    key = jax.random.PRNGKey(0)
    kx, kp, kn1, kn2 = jax.random.split(key, 4)

    x = jax.random.normal(kx, (B, Vin, Cin), jnp.float32)
    lap = make_ring_laplacian(V)
    params = init_params(kp, Cin, Cmid, Cout, K)

    noise1 = jax.random.uniform(kn1, (S, B * Cin, V), jnp.float32,
                                minval=1e-6, maxval=1.0 - 1e-6)
    noise2 = jax.random.uniform(kn2, (S, B * Cmid, V), jnp.float32,
                                minval=1e-6, maxval=1.0 - 1e-6)

    fwd = jax.jit(functools.partial(bayesian_spherical_cheb_bn_pool2,
                                    K=K, pool_size=pool_size, p1=p1, p2=p2))
    out = jax.block_until_ready(fwd(x, lap, params, noise1, noise2))

    assert out.shape == (S, B, V, Cout), out.shape
    assert out.dtype == jnp.float32
    assert bool(jnp.all(jnp.isfinite(out)))
    assert bool(jnp.all(out >= 0.0))     # ReLU output

    # Pure-JAX f32 reference with identical dropout masks; loose tolerance for
    # the bf16-input / f32-accumulate MXU path in the kernel.
    ref = jnp.stack([
        _reference_forward(x, lap, params,
                           _concrete_retain_mask(noise1[s], p1),
                           _concrete_retain_mask(noise2[s], p2),
                           K=K, pool_size=pool_size)
        for s in range(S)])
    max_err = float(jnp.max(jnp.abs(out - ref)))
    assert max_err < 0.1, f"max abs error vs f32 reference: {max_err}"

    print("KERNEL_OK")
</pallas_src>

<mosaic_0001>
module attributes {stable_mosaic.version = 11 : i64} {
  func.func @_pool_cheb_bn2_kernel(%arg0: i32, %arg1: memref<4x16x128xf32, #tpu.memory_space<vmem>>, %arg2: memref<1x16x128xf32, #tpu.memory_space<vmem>>, %arg3: memref<1x32x128xf32, #tpu.memory_space<vmem>>, %arg4: memref<128x128xbf16, #tpu.memory_space<vmem>>, %arg5: memref<32x48xbf16, #tpu.memory_space<vmem>>, %arg6: memref<16x1xf32, #tpu.memory_space<vmem>>, %arg7: memref<16x1xf32, #tpu.memory_space<vmem>>, %arg8: memref<16x1xf32, #tpu.memory_space<vmem>>, %arg9: memref<16x96xbf16, #tpu.memory_space<vmem>>, %arg10: memref<8x1xf32, #tpu.memory_space<vmem>>, %arg11: memref<8x1xf32, #tpu.memory_space<vmem>>, %arg12: memref<8x1xf32, #tpu.memory_space<vmem>>, %arg13: memref<1x16x128xf32, #tpu.memory_space<vmem>>) attributes {dimension_semantics = [#tpu.dimension_semantics<parallel>], iteration_bounds = array<i64: 2>, scalar_prefetch = 0 : i64, scratch_operands = 0 : i64, tpu.core_type = #tpu.core_type<tc>, window_params = [{pipeline_mode = #tpu.pipeline_mode<synchronous>, transform_indices = @transform_0, window_bounds = array<i64: 4, 16, 128>}, {transform_indices = @transform_1, window_bounds = array<i64: 1, 16, 128>}, {transform_indices = @transform_2, window_bounds = array<i64: 1, 32, 128>}, {pipeline_mode = #tpu.pipeline_mode<synchronous>, transform_indices = @transform_3, window_bounds = array<i64: 128, 128>}, {pipeline_mode = #tpu.pipeline_mode<synchronous>, transform_indices = @transform_4, window_bounds = array<i64: 32, 48>}, {pipeline_mode = #tpu.pipeline_mode<synchronous>, transform_indices = @transform_5, window_bounds = array<i64: 16, 1>}, {pipeline_mode = #tpu.pipeline_mode<synchronous>, transform_indices = @transform_6, window_bounds = array<i64: 16, 1>}, {pipeline_mode = #tpu.pipeline_mode<synchronous>, transform_indices = @transform_7, window_bounds = array<i64: 16, 1>}, {pipeline_mode = #tpu.pipeline_mode<synchronous>, transform_indices = @transform_8, window_bounds = array<i64: 16, 96>}, {pipeline_mode = #tpu.pipeline_mode<synchronous>, transform_indices = @transform_9, window_bounds = array<i64: 8, 1>}, {pipeline_mode = #tpu.pipeline_mode<synchronous>, transform_indices = @transform_10, window_bounds = array<i64: 8, 1>}, {pipeline_mode = #tpu.pipeline_mode<synchronous>, transform_indices = @transform_11, window_bounds = array<i64: 8, 1>}, {transform_indices = @transform_12, window_bounds = array<i64: 1, 16, 128>}]} {
    %c0 = arith.constant 0 : index
    %c0_0 = arith.constant 0 : index
    %c0_1 = arith.constant 0 : index
    %0 = vector.load %arg1[%c0, %c0_0, %c0_1] : memref<4x16x128xf32, #tpu.memory_space<vmem>>, vector<1x16x128xf32>
    %1 = vector.shape_cast %0 : vector<1x16x128xf32> to vector<16x128xf32>
    %c1 = arith.constant 1 : index
    %c0_2 = arith.constant 0 : index
    %c0_3 = arith.constant 0 : index
    %2 = vector.load %arg1[%c1, %c0_2, %c0_3] : memref<4x16x128xf32, #tpu.memory_space<vmem>>, vector<1x16x128xf32>
    %3 = vector.shape_cast %2 : vector<1x16x128xf32> to vector<16x128xf32>
    %4 = arith.maximumf %1, %3 : vector<16x128xf32>
    %c2 = arith.constant 2 : index
    %c0_4 = arith.constant 0 : index
    %c0_5 = arith.constant 0 : index
    %5 = vector.load %arg1[%c2, %c0_4, %c0_5] : memref<4x16x128xf32, #tpu.memory_space<vmem>>, vector<1x16x128xf32>
    %6 = vector.shape_cast %5 : vector<1x16x128xf32> to vector<16x128xf32>
    %7 = arith.maximumf %4, %6 : vector<16x128xf32>
    %c3 = arith.constant 3 : index
    %c0_6 = arith.constant 0 : index
    %c0_7 = arith.constant 0 : index
    %8 = vector.load %arg1[%c3, %c0_6, %c0_7] : memref<4x16x128xf32, #tpu.memory_space<vmem>>, vector<1x16x128xf32>
    %9 = vector.shape_cast %8 : vector<1x16x128xf32> to vector<16x128xf32>
    %10 = arith.maximumf %7, %9 : vector<16x128xf32>
    %c0_8 = arith.constant 0 : index
    %c0_9 = arith.constant 0 : index
    %11 = vector.load %arg4[%c0_8, %c0_9] : memref<128x128xbf16, #tpu.memory_space<vmem>>, vector<128x128xbf16>
    %c0_10 = arith.constant 0 : index
    %c0_11 = arith.constant 0 : index
    %c0_12 = arith.constant 0 : index
    %12 = vector.load %arg2[%c0_10, %c0_11, %c0_12] : memref<1x16x128xf32, #tpu.memory_space<vmem>>, vector<1x16x128xf32>
    %13 = vector.shape_cast %12 : vector<1x16x128xf32> to vector<16x128xf32>
    %14 = arith.mulf %10, %13 : vector<16x128xf32>
    %15 = arith.truncf %14 : vector<16x128xf32> to vector<16x128xbf16>
    %cst = arith.constant dense<0.000000e+00> : vector<16x128xf32>
    %16 = tpu.matmul %15, %11, %cst {dimension_numbers = #tpu.dot_dimension_numbers<[1], [0], [0], [1], [0, 0, 1, 1], [], []>} : vector<16x128xbf16>, vector<128x128xbf16>, vector<16x128xf32> -> vector<16x128xf32>
    %17 = arith.truncf %16 : vector<16x128xf32> to vector<16x128xbf16>
    %cst_13 = arith.constant dense<0.000000e+00> : vector<16x128xf32>
    %18 = tpu.matmul %17, %11, %cst_13 {dimension_numbers = #tpu.dot_dimension_numbers<[1], [0], [0], [1], [0, 0, 1, 1], [], []>} : vector<16x128xbf16>, vector<128x128xbf16>, vector<16x128xf32> -> vector<16x128xf32>
    %cst_14 = arith.constant 2.000000e+00 : f32
    %19 = vector.broadcast %cst_14 : f32 to vector<16x128xf32>
    %20 = arith.mulf %19, %18 : vector<16x128xf32>
    %21 = arith.subf %20, %14 : vector<16x128xf32>
    %22 = tpu.concatenate %14, %16, %21 in 0 : vector<16x128xf32>, vector<16x128xf32>, vector<16x128xf32> -> vector<48x128xf32>
    %c0_15 = arith.constant 0 : index
    %c0_16 = arith.constant 0 : index
    %23 = vector.load %arg5[%c0_15, %c0_16] : memref<32x48xbf16, #tpu.memory_space<vmem>>, vector<32x48xbf16>
    %24 = arith.truncf %22 : vector<48x128xf32> to vector<48x128xbf16>
    %cst_17 = arith.constant dense<0.000000e+00> : vector<32x128xf32>
    %25 = tpu.matmul %23, %24, %cst_17 {dimension_numbers = #tpu.dot_dimension_numbers<[1], [0], [0], [1], [0, 0, 1, 1], [], []>} : vector<32x48xbf16>, vector<48x128xbf16>, vector<32x128xf32> -> vector<32x128xf32>
    %26 = vector.shape_cast %25 : vector<32x128xf32> to vector<2x16x128xf32>
    %c0_18 = arith.constant 0 : index
    %c0_19 = arith.constant 0 : index
    %27 = vector.load %arg6[%c0_18, %c0_19] : memref<16x1xf32, #tpu.memory_space<vmem>>, vector<16x1xf32>
    %28 = vector.shape_cast %27 : vector<16x1xf32> to vector<1x16x1xf32>
    %29 = vector.broadcast %28 : vector<1x16x1xf32> to vector<2x16x128xf32>
    %30 = arith.addf %26, %29 : vector<2x16x128xf32>
    %cst_20 = arith.constant dense<0.000000e+00> : vector<2x16xf32>
    %31 = vector.multi_reduction <add>, %30, %cst_20 [2] : vector<2x16x128xf32> to vector<2x16xf32>
    %32 = vector.shape_cast %31 : vector<2x16xf32> to vector<2x16x1xf32>
    %cst_21 = arith.constant dense<0.000000e+00> : vector<16x1xf32>
    %33 = vector.multi_reduction <add>, %32, %cst_21 [0] : vector<2x16x1xf32> to vector<16x1xf32>
    %34 = vector.shape_cast %33 : vector<16x1xf32> to vector<1x16x1xf32>
    %cst_22 = arith.constant 3.906250e-03 : f32
    %35 = vector.broadcast %cst_22 : f32 to vector<1x16x1xf32>
    %36 = arith.mulf %34, %35 : vector<1x16x1xf32>
    %37 = vector.broadcast %36 : vector<1x16x1xf32> to vector<2x16x128xf32>
    %38 = arith.subf %30, %37 : vector<2x16x128xf32>
    %39 = arith.mulf %38, %38 : vector<2x16x128xf32>
    %cst_23 = arith.constant dense<0.000000e+00> : vector<2x16xf32>
    %40 = vector.multi_reduction <add>, %39, %cst_23 [2] : vector<2x16x128xf32> to vector<2x16xf32>
    %41 = vector.shape_cast %40 : vector<2x16xf32> to vector<2x16x1xf32>
    %cst_24 = arith.constant dense<0.000000e+00> : vector<16x1xf32>
    %42 = vector.multi_reduction <add>, %41, %cst_24 [0] : vector<2x16x1xf32> to vector<16x1xf32>
    %43 = vector.shape_cast %42 : vector<16x1xf32> to vector<1x16x1xf32>
    %cst_25 = arith.constant 3.906250e-03 : f32
    %44 = vector.broadcast %cst_25 : f32 to vector<1x16x1xf32>
    %45 = arith.mulf %43, %44 : vector<1x16x1xf32>
    %c0_26 = arith.constant 0 : index
    %c0_27 = arith.constant 0 : index
    %46 = vector.load %arg7[%c0_26, %c0_27] : memref<16x1xf32, #tpu.memory_space<vmem>>, vector<16x1xf32>
    %47 = vector.shape_cast %46 : vector<16x1xf32> to vector<1x16x1xf32>
    %cst_28 = arith.constant 9.99999974E-6 : f32
    %48 = vector.broadcast %cst_28 : f32 to vector<1x16x1xf32>
    %49 = arith.addf %45, %48 : vector<1x16x1xf32>
    %50 = math.rsqrt %49 : vector<1x16x1xf32>
    %51 = arith.mulf %47, %50 : vector<1x16x1xf32>
    %52 = vector.broadcast %51 : vector<1x16x1xf32> to vector<2x16x128xf32>
    %53 = arith.mulf %38, %52 : vector<2x16x128xf32>
    %c0_29 = arith.constant 0 : index
    %c0_30 = arith.constant 0 : index
    %54 = vector.load %arg8[%c0_29, %c0_30] : memref<16x1xf32, #tpu.memory_space<vmem>>, vector<16x1xf32>
    %55 = vector.shape_cast %54 : vector<16x1xf32> to vector<1x16x1xf32>
    %56 = vector.broadcast %55 : vector<1x16x1xf32> to vector<2x16x128xf32>
    %57 = arith.addf %53, %56 : vector<2x16x128xf32>
    %cst_31 = arith.constant 0.000000e+00 : f32
    %58 = vector.broadcast %cst_31 : f32 to vector<2x16x128xf32>
    %59 = arith.maximumf %57, %58 : vector<2x16x128xf32>
    %60 = vector.shape_cast %59 : vector<2x16x128xf32> to vector<32x128xf32>
    %c0_32 = arith.constant 0 : index
    %c0_33 = arith.constant 0 : index
    %c0_34 = arith.constant 0 : index
    %61 = vector.load %arg3[%c0_32, %c0_33, %c0_34] : memref<1x32x128xf32, #tpu.memory_space<vmem>>, vector<1x32x128xf32>
    %62 = vector.shape_cast %61 : vector<1x32x128xf32> to vector<32x128xf32>
    %63 = arith.mulf %60, %62 : vector<32x128xf32>
    %64 = arith.truncf %63 : vector<32x128xf32> to vector<32x128xbf16>
    %cst_35 = arith.constant dense<0.000000e+00> : vector<32x128xf32>
    %65 = tpu.matmul %64, %11, %cst_35 {dimension_numbers = #tpu.dot_dimension_numbers<[1], [0], [0], [1], [0, 0, 1, 1], [], []>} : vector<32x128xbf16>, vector<128x128xbf16>, vector<32x128xf32> -> vector<32x128xf32>
    %66 = arith.truncf %65 : vector<32x128xf32> to vector<32x128xbf16>
    %cst_36 = arith.constant dense<0.000000e+00> : vector<32x128xf32>
    %67 = tpu.matmul %66, %11, %cst_36 {dimension_numbers = #tpu.dot_dimension_numbers<[1], [0], [0], [1], [0, 0, 1, 1], [], []>} : vector<32x128xbf16>, vector<128x128xbf16>, vector<32x128xf32> -> vector<32x128xf32>
    %cst_37 = arith.constant 2.000000e+00 : f32
    %68 = vector.broadcast %cst_37 : f32 to vector<32x128xf32>
    %69 = arith.mulf %68, %67 : vector<32x128xf32>
    %70 = arith.subf %69, %63 : vector<32x128xf32>
    %71 = tpu.concatenate %63, %65, %70 in 0 : vector<32x128xf32>, vector<32x128xf32>, vector<32x128xf32> -> vector<96x128xf32>
    %c0_38 = arith.constant 0 : index
    %c0_39 = arith.constant 0 : index
    %72 = vector.load %arg9[%c0_38, %c0_39] : memref<16x96xbf16, #tpu.memory_space<vmem>>, vector<16x96xbf16>
    %73 = arith.truncf %71 : vector<96x128xf32> to vector<96x128xbf16>
    %cst_40 = arith.constant dense<0.000000e+00> : vector<16x128xf32>
    %74 = tpu.matmul %72, %73, %cst_40 {dimension_numbers = #tpu.dot_dimension_numbers<[1], [0], [0], [1], [0, 0, 1, 1], [], []>} : vector<16x96xbf16>, vector<96x128xbf16>, vector<16x128xf32> -> vector<16x128xf32>
    %75 = vector.shape_cast %74 : vector<16x128xf32> to vector<2x8x128xf32>
    %c0_41 = arith.constant 0 : index
    %c0_42 = arith.constant 0 : index
    %76 = vector.load %arg10[%c0_41, %c0_42] : memref<8x1xf32, #tpu.memory_space<vmem>>, vector<8x1xf32>
    %77 = vector.shape_cast %76 : vector<8x1xf32> to vector<1x8x1xf32>
    %78 = vector.broadcast %77 : vector<1x8x1xf32> to vector<2x8x128xf32>
    %79 = arith.addf %75, %78 : vector<2x8x128xf32>
    %cst_43 = arith.constant dense<0.000000e+00> : vector<2x8xf32>
    %80 = vector.multi_reduction <add>, %79, %cst_43 [2] : vector<2x8x128xf32> to vector<2x8xf32>
    %81 = vector.shape_cast %80 : vector<2x8xf32> to vector<2x8x1xf32>
    %cst_44 = arith.constant dense<0.000000e+00> : vector<8x1xf32>
    %82 = vector.multi_reduction <add>, %81, %cst_44 [0] : vector<2x8x1xf32> to vector<8x1xf32>
    %83 = vector.shape_cast %82 : vector<8x1xf32> to vector<1x8x1xf32>
    %cst_45 = arith.constant 3.906250e-03 : f32
    %84 = vector.broadcast %cst_45 : f32 to vector<1x8x1xf32>
    %85 = arith.mulf %83, %84 : vector<1x8x1xf32>
    %86 = vector.broadcast %85 : vector<1x8x1xf32> to vector<2x8x128xf32>
    %87 = arith.subf %79, %86 : vector<2x8x128xf32>
    %88 = arith.mulf %87, %87 : vector<2x8x128xf32>
    %cst_46 = arith.constant dense<0.000000e+00> : vector<2x8xf32>
    %89 = vector.multi_reduction <add>, %88, %cst_46 [2] : vector<2x8x128xf32> to vector<2x8xf32>
    %90 = vector.shape_cast %89 : vector<2x8xf32> to vector<2x8x1xf32>
    %cst_47 = arith.constant dense<0.000000e+00> : vector<8x1xf32>
    %91 = vector.multi_reduction <add>, %90, %cst_47 [0] : vector<2x8x1xf32> to vector<8x1xf32>
    %92 = vector.shape_cast %91 : vector<8x1xf32> to vector<1x8x1xf32>
    %cst_48 = arith.constant 3.906250e-03 : f32
    %93 = vector.broadcast %cst_48 : f32 to vector<1x8x1xf32>
    %94 = arith.mulf %92, %93 : vector<1x8x1xf32>
    %c0_49 = arith.constant 0 : index
    %c0_50 = arith.constant 0 : index
    %95 = vector.load %arg11[%c0_49, %c0_50] : memref<8x1xf32, #tpu.memory_space<vmem>>, vector<8x1xf32>
    %96 = vector.shape_cast %95 : vector<8x1xf32> to vector<1x8x1xf32>
    %cst_51 = arith.constant 9.99999974E-6 : f32
    %97 = vector.broadcast %cst_51 : f32 to vector<1x8x1xf32>
    %98 = arith.addf %94, %97 : vector<1x8x1xf32>
    %99 = math.rsqrt %98 : vector<1x8x1xf32>
    %100 = arith.mulf %96, %99 : vector<1x8x1xf32>
    %101 = vector.broadcast %100 : vector<1x8x1xf32> to vector<2x8x128xf32>
    %102 = arith.mulf %87, %101 : vector<2x8x128xf32>
    %c0_52 = arith.constant 0 : index
    %c0_53 = arith.constant 0 : index
    %103 = vector.load %arg12[%c0_52, %c0_53] : memref<8x1xf32, #tpu.memory_space<vmem>>, vector<8x1xf32>
    %104 = vector.shape_cast %103 : vector<8x1xf32> to vector<1x8x1xf32>
    %105 = vector.broadcast %104 : vector<1x8x1xf32> to vector<2x8x128xf32>
    %106 = arith.addf %102, %105 : vector<2x8x128xf32>
    %cst_54 = arith.constant 0.000000e+00 : f32
    %107 = vector.broadcast %cst_54 : f32 to vector<2x8x128xf32>
    %108 = arith.maximumf %106, %107 : vector<2x8x128xf32>
    %109 = vector.shape_cast %108 : vector<2x8x128xf32> to vector<16x128xf32>
    %c0_55 = arith.constant 0 : index
    %c0_56 = arith.constant 0 : index
    %c0_57 = arith.constant 0 : index
    %110 = vector.load %arg13[%c0_55, %c0_56, %c0_57] : memref<1x16x128xf32, #tpu.memory_space<vmem>>, vector<1x16x128xf32>
    %111 = vector.shape_cast %110 : vector<1x16x128xf32> to vector<16x128xf32>
    %112 = vector.shape_cast %109 : vector<16x128xf32> to vector<1x16x128xf32>
    tpu.vector_store %arg13[%c0_55, %c0_56, %c0_57], %112 {strides = array<i32>} : memref<1x16x128xf32, #tpu.memory_space<vmem>>, vector<1x16x128xf32>,
    return
  }
  func.func @transform_0(%arg0: i32) -> (i32, i32, i32) {
    %c0_i32 = arith.constant 0 : i32
    %c0_i32_0 = arith.constant 0 : i32
    %c0_i32_1 = arith.constant 0 : i32
    %c0_i32_2 = arith.constant 0 : i32
    return %c0_i32, %c0_i32_0, %c0_i32_1 : i32, i32, i32
  }
  func.func @transform_1(%arg0: i32) -> (i32, i32, i32) {
    %c0_i32 = arith.constant 0 : i32
    %c0_i32_0 = arith.constant 0 : i32
    %c0_i32_1 = arith.constant 0 : i32
    return %arg0, %c0_i32, %c0_i32_0 : i32, i32, i32
  }
  func.func @transform_2(%arg0: i32) -> (i32, i32, i32) {
    %c0_i32 = arith.constant 0 : i32
    %c0_i32_0 = arith.constant 0 : i32
    %c0_i32_1 = arith.constant 0 : i32
    return %arg0, %c0_i32, %c0_i32_0 : i32, i32, i32
  }
  func.func @transform_3(%arg0: i32) -> (i32, i32) {
    %c0_i32 = arith.constant 0 : i32
    %c0_i32_0 = arith.constant 0 : i32
    %c0_i32_1 = arith.constant 0 : i32
    return %c0_i32, %c0_i32_0 : i32, i32
  }
  func.func @transform_4(%arg0: i32) -> (i32, i32) {
    %c0_i32 = arith.constant 0 : i32
    %c0_i32_0 = arith.constant 0 : i32
    %c0_i32_1 = arith.constant 0 : i32
    return %c0_i32, %c0_i32_0 : i32, i32
  }
  func.func @transform_5(%arg0: i32) -> (i32, i32) {
    %c0_i32 = arith.constant 0 : i32
    %c0_i32_0 = arith.constant 0 : i32
    %c0_i32_1 = arith.constant 0 : i32
    return %c0_i32, %c0_i32_0 : i32, i32
  }
  func.func @transform_6(%arg0: i32) -> (i32, i32) {
    %c0_i32 = arith.constant 0 : i32
    %c0_i32_0 = arith.constant 0 : i32
    %c0_i32_1 = arith.constant 0 : i32
    return %c0_i32, %c0_i32_0 : i32, i32
  }
  func.func @transform_7(%arg0: i32) -> (i32, i32) {
    %c0_i32 = arith.constant 0 : i32
    %c0_i32_0 = arith.constant 0 : i32
    %c0_i32_1 = arith.constant 0 : i32
    return %c0_i32, %c0_i32_0 : i32, i32
  }
  func.func @transform_8(%arg0: i32) -> (i32, i32) {
    %c0_i32 = arith.constant 0 : i32
    %c0_i32_0 = arith.constant 0 : i32
    %c0_i32_1 = arith.constant 0 : i32
    return %c0_i32, %c0_i32_0 : i32, i32
  }
  func.func @transform_9(%arg0: i32) -> (i32, i32) {
    %c0_i32 = arith.constant 0 : i32
    %c0_i32_0 = arith.constant 0 : i32
    %c0_i32_1 = arith.constant 0 : i32
    return %c0_i32, %c0_i32_0 : i32, i32
  }
  func.func @transform_10(%arg0: i32) -> (i32, i32) {
    %c0_i32 = arith.constant 0 : i32
    %c0_i32_0 = arith.constant 0 : i32
    %c0_i32_1 = arith.constant 0 : i32
    return %c0_i32, %c0_i32_0 : i32, i32
  }
  func.func @transform_11(%arg0: i32) -> (i32, i32) {
    %c0_i32 = arith.constant 0 : i32
    %c0_i32_0 = arith.constant 0 : i32
    %c0_i32_1 = arith.constant 0 : i32
    return %c0_i32, %c0_i32_0 : i32, i32
  }
  func.func @transform_12(%arg0: i32) -> (i32, i32, i32) {
    %c0_i32 = arith.constant 0 : i32
    %c0_i32_0 = arith.constant 0 : i32
    %c0_i32_1 = arith.constant 0 : i32
    return %arg0, %c0_i32, %c0_i32_0 : i32, i32, i32
  }
}

</mosaic_0001>

<bundles_post_ra>
// kernel: bayesian_spherical_cheb_bn_pool2.1
= control target key start
LH: loop header
LB: loop body
LE: loop exit
PB: predicated region body
PF: predicated region fallthrough
CT: control target
= control target key end

     0   :  { %17 = vsyncpa [#allocation3], 0  ;;  %s1412_s0 = inlined_call_operand.vmem [shape: f32[4,16,128], index: 0, kind: input, shape index: {}]   ;;  %s1413_s1 = inlined_call_operand.vmem [shape: f32[2,16,128], index: 1, kind: input, shape index: {}]   ;;  %s1414_s2 = inlined_call_operand.vmem [shape: f32[2,32,128], index: 2, kind: input, shape index: {}]   ;;  %s1415_s3 = inlined_call_operand.vmem [shape: bf16[128,128], index: 3, kind: input, shape index: {}]   ;;  %s1416_s4 = inlined_call_operand.vmem [shape: bf16[32,48], index: 4, kind: input, shape index: {}]   ;;  %s1417_s5 = inlined_call_operand.vmem [shape: f32[16,1], index: 5, kind: input, shape index: {}]   ;;  %s1418_s6 = inlined_call_operand.vmem [shape: f32[16,1], index: 6, kind: input, shape index: {}]   ;;  %s1419_s7 = inlined_call_operand.vmem [shape: f32[16,1], index: 7, kind: input, shape index: {}]   ;;  %s1420_s8 = inlined_call_operand.vmem [shape: bf16[16,96], index: 8, kind: input, shape index: {}]   ;;  %s1421_s9 = inlined_call_operand.vmem [shape: f32[8,1], index: 9, kind: input, shape index: {}]   ;;  %s1422_s10 = inlined_call_operand.vmem [shape: f32[8,1], index: 10, kind: input, shape index: {}]   ;;  %s1423_s11 = inlined_call_operand.vmem [shape: f32[8,1], index: 11, kind: input, shape index: {}]   ;;  %s1424_s12 = inlined_call_operand.hbm [shape: f32[2,16,128], index: 12, kind: output, shape index: {}]  }
   0x1   :  { %19 = vsyncpa [#allocation3 + $0x1], 0  ;;  %s1196_s21 = smov 0   ;;  %s1198_s22 = smov 0  }
   0x2   :  { %s1200_s23 = smov 0   ;;  %s1202_s24 = smov 0  }
   0x3 LB: > { %1426 = sst [smem:[#allocation5_spill]] %s1122_s23  ;;  %s1217_s25 = sadd.s32 4294967295, %s1126_s24   ;;  %s1126_s24 = sphi %s1202_s24, %s1434_s24   ;;  %s1122_s23 = sphi %s1200_s23, %s1431_s23   ;;  %s1118_s22 = sphi %s1198_s22, %s1433_s22   ;;  %s1114_s21 = sphi %s1196_s21, %s1432_s21  }
   0x4   : > { %s932_s26 = sadd.s32 4294967294, %s1126_s24   ;;  %s1221_s27 = sadd.s32 1, %s1126_s24  }
   0x5   : > { %s294_s28 = sadd.s32 1, %s1122_s23  ;;  %s291_s29 = ssub.s32 %s1126_s24, %s1221_s27 }
   0x6   : > { %p304_p0 = scmp.ne.s32.totalorder %s1122_s23, %s1118_s22  ;;  %p292_p1 = scmp.eq.s32.totalorder %s291_s29, 0 }
   0x7   : > { %p305_p2 = scmp.eq.s32.totalorder %s1217_s25, 1  ;;  %p310_p3 = scmp.ne.s32.totalorder %s1118_s22, %s1114_s21 }
   0x8   : > { %p311_p4 = scmp.eq.s32.totalorder %s932_s26, 1  ;;  %p935_p7 = scmp.ge.s32.totalorder %s1126_s24, 1 }
   0x9   : > { %s1232_s30 = scalar_select %p292_p1, %s1122_s23, %s294_s28  }
   0xa   : > { %p1234_p5 = por %p305_p2, %p304_p0  ;;  %p1238_p6 = por %p311_p4, %p310_p3 }
   0xb   : > { %1427 = sst [smem:[#allocation6_spill]] %s1232_s30  ;;  %p375_p8 = scmp.lt.s32.totalorder %s1126_s24, 3 }
   0xd   : > { %p376_p9 = pnand %p935_p7, %p375_p8 }
   0xe   : > { %p422_p10 = scmp.lt.s32.totalorder (!%p376_p9), %s1217_s25, 1  ;;  %s419_s20 = sand.u32 (!%p376_p9), 1, %s1118_s22  }
   0xf   : > { %379 = sbr.rel (%p376_p9) target bundleno = 1757 (0x6dd), region = 68  ;;  %s1012_s29 = sshll.u32 (!%p376_p9), %s1217_s25, 4 }
  0x14   : > { %v1247_v0 = vld [vmem:[%s1415_s3 + $0x38] sm:$0xff]  ;;  %v1253_v1 = vld [vmem:[%s1415_s3 + $0x30] sm:$0xff]  ;;  %v1261_v2 = vld [vmem:[%s1415_s3 + $0x28] sm:$0xff]  ;;  %s1287_s26 = scalar_select %p422_p10, %s1217_s25, 1  ;;  %v1128_v30 = vmov 0   ;;  %vm567_vm0 = vcmask 392192  }
  0x15   : > { %519 = vmatpush.bf16.msra.mxu0 %v1247_v0  ;;  %534 = vmatpush.bf16.msra.mxu1 %v1247_v0  ;;  %v1269_v3 = vld [vmem:[%s1415_s3 + $0x20] sm:$0xff]  ;;  %v434_v5 = vld [vmem:[%s1412_s0 + $0x8] sm:$0xff]  ;;  %v941_v6 = vld [vmem:[%s1412_s0 + $0x10] sm:$0xff]  ;;  %vm768_vm7 = vcmask 785408   ;;  %s843_s25 = scalar_lea.sflag [#allocation3], %s419_s20 }
  0x16   : > { %711 = vmatpush.bf16.msra.mxu3 %v1247_v0  ;;  %v433_v4 = vld [vmem:[%s1412_s0] sm:$0xff]  ;;  %v942_v7 = vld [vmem:[%s1412_s0 + $0x18] sm:$0xff]  ;;  %v944_v12 = vld [vmem:[%s1412_s0 + $0x28] sm:$0xff]  ;;  %s999_s18 = sshll.u32 %s1287_s26, 4  ;;  %1055 = vset.pattern.permute.xlu0 %v1128_v30  ;;  %s1000_s28 = sshll.u32 %s1287_s26, 5 }
  0x17   : > { %v438_v8 = vmax.f32 %v433_v4, %v941_v6  ;;  %v439_v9 = vmax.f32 %v434_v5, %v942_v7  ;;  %v1293_v10 = vld [vmem:[%s1415_s3 + $0x18] sm:$0xff]  ;;  %v943_v11 = vld [vmem:[%s1412_s0 + $0x20] sm:$0xff]  ;;  %v1003_v15 = vld [vmem:[%s1415_s3 + $0x10] sm:$0xff]  ;;  %s426_s23 = scalar_lea.vmem %s1413_s1, %s999_s18  ;;  %1056 = vset.pattern.permute.xlu2 %v1128_v30  ;;  %1057 = vset.pattern.permute.xlu1 %v1128_v30  ;;  %s431_s18 = scalar_lea.vmem %s1414_s2, %s1000_s28 }
  0x18   : > { %v945_v16 = vld [vmem:[%s1412_s0 + $0x30] sm:$0xff]  ;;  %v946_v17 = vld [vmem:[%s1412_s0 + $0x38] sm:$0xff]  ;;  %v1002_v20 = vld [vmem:[%s1415_s3 + $0x8] sm:$0xff]  ;;  %s936_s28 = sshll.u32 %s419_s20, 4  ;;  %s854_s26 = scalar_lea.hbm %s1424_s12, %s1012_s29 }
  0x19   : > { %520 = vmatpush.bf16.msra.mxu0 %v1253_v1  ;;  %535 = vmatpush.bf16.msra.mxu1 %v1253_v1  ;;  %v443_v13 = vmax.f32 %v438_v8, %v943_v11  ;;  %v444_v14 = vmax.f32 %v439_v9, %v944_v12  ;;  %v466_v21 = vld [vmem:[%s426_s23] sm:$0xff]  ;;  %v467_v22 = vld [vmem:[%s426_s23 + $0x8] sm:$0xff]  ;;  %s421_s15 = scalar_lea.vmem [#allocation2], %s936_s28  ;;  %s857_s30 = sshll.u32 %s854_s26, 4  ;;  %s858_s30 = int_to_ptr.hbm [resolvable:$true] %s857_s30 }
  0x1a   : > { %712 = vmatpush.bf16.msra.mxu3 %v1253_v1  ;;  %v1001_v25 = vld [vmem:[%s1415_s3] sm:$0xff]  ;;  %v594_v39 = vld [vmem:[%s1417_s5 + $0x8] sm:$0xff]  ;;  %s855_s16 = sshll.u32 %s421_s15, 4  ;;  %s1078_s17 = sshra.s32 %s858_s30, 4  ;;  %s856_s16 = int_to_ptr.vmem [resolvable:$true] %s855_s16  ;;  %s1079_s17 = int_to_ptr.hbm [resolvable:$true] %s1078_s17 }
  0x1b   : > { %v448_v18 = vmax.f32 %v443_v13, %v945_v16  ;;  %v449_v19 = vmax.f32 %v444_v14, %v946_v17  ;;  %v593_v35 = vld [vmem:[%s1417_s5] sm:$0xff]  ;;  %v1010_v41 = vld [vmem:[%s1416_s4 + $0x8] sm:$0xff]  ;;  %s1080_s19 = scalar_lea.hbm %s1079_s17, 16  ;;  %s1084_s23 = scalar_lea.hbm %s1424_s12, 32 }
  0x1c   : > { %597 = vperm.xlu0 %1055, %v593_v35   ;;  %v1009_v40 = vld [vmem:[%s1416_s4] sm:$0xff]  ;;  %p1081_p11 = scmp.ne.s32.totalorder %s1079_s17, %s1080_s19  ;;  %p1085_p0 = scmp.lt.s32.totalorder %s1079_s17, %s1424_s12 }
  0x1d   : > { %521 = vmatpush.bf16.msra.mxu0 %v1261_v2  ;;  %536 = vmatpush.bf16.msra.mxu1 %v1261_v2  ;;  %v468_v23 = vmul.f32 %v466_v21, %v448_v18  ;;  %v469_v24 = vmul.f32 %v467_v22, %v449_v19  ;;  %v641_v19 = vld [vmem:[%s1418_s6] sm:$0xff]  ;;  %p1086_p1 = scmp.lt.s32.totalorder %s1084_s23, %s1080_s19 }
  0x1e   : > { %713 = vmatpush.bf16.msra.mxu3 %v1261_v2  ;;  %p1082_p12 = pnand %p1081_p11, %p1234_p5 }
  0x1f   : > { %v470_v26 = vpack.c.bf16 %v469_v24, %v468_v23  ;;  %p1087_p2 = por %p1086_p1, %p1085_p0 }
  0x20   : > { %p1083_p13 = pneg %p1082_p12 }
  0x21   : > { %522 = vmatpush.bf16.msra.mxu0 %v1269_v3  ;;  %537 = vmatpush.bf16.msra.mxu1 %v1269_v3 }
  0x22   : > { %714 = vmatpush.bf16.msra.mxu3 %v1269_v3  ;;  %p1088_p3 = pnand %p1087_p2, %p1083_p13 }
  0x24   : > { %602 = vperm.xlu0 %1055, %v594_v39  }
  0x25   : > { %523 = vmatpush.bf16.msra.mxu0 %v1293_v10  ;;  %538 = vmatpush.bf16.msra.mxu1 %v1293_v10 }
  0x26   : > { %715 = vmatpush.bf16.msra.mxu3 %v1293_v10 }
  0x29   : > { %524 = vmatpush.bf16.msra.mxu0 %v1003_v15  ;;  %539 = vmatpush.bf16.msra.mxu1 %v1003_v15 }
  0x2a   : > { %716 = vmatpush.bf16.msra.mxu3 %v1003_v15 }
  0x2d   : > { %525 = vmatpush.bf16.msra.mxu0 %v1002_v20  ;;  %540 = vmatpush.bf16.msra.mxu1 %v1002_v20 }
  0x2e   : > { %717 = vmatpush.bf16.msra.mxu3 %v1002_v20 }
  0x31   : > { %526 = vmatpush.bf16.msra.mxu0 %v1001_v25  ;;  %541 = vmatpush.bf16.msra.mxu1 %v1001_v25 }
  0x32   : > { %718 = vmatpush.bf16.msra.mxu3 %v1001_v25 }
  0x34   : > { %527 = vmatmul.bf16.vlgmr.msra.gmra.mxu0 %v470_v26 }
  0x8e   : > { %v598_v42 = vpop.permute.xlu0 %597 }
  0x96   : > { %v603_v45 = vpop.permute.xlu0 %602 }
  0xb1   : > { %v528_v27 = vpop.f32.mrf.mxu0 }
  0xb9   : > { %v530_v28 = vpop.f32.mrf.mxu0 }
  0xba   : > { %v533_v29 = vpack.c.bf16 %v530_v28, %v528_v27 }
  0xbc   : > { %542 = vmatmul.bf16.vlgmr.msra.gmra.mxu1 %v533_v29 }
 0x139   : > { %v543_v31 = vpop.f32.mrf.mxu1 }
 0x13a   : > { %v548_v32 = vmul.f32 2.0, %v543_v31 }
 0x13c   : > { %v550_v37 = vsub.f32 %v548_v32, %v468_v23  ;;  %v682_v32 = vld [vmem:[%s1419_s7 + $0x8] sm:$0xff] }
 0x141   : > { %v545_v33 = vpop.f32.mrf.mxu1 }
 0x142   : > { %v549_v34 = vmul.f32 2.0, %v545_v33 }
 0x144   : > { %v551_v36 = vsub.f32 %v549_v34, %v469_v24  ;;  %v786_v34 = vld [vmem:[%s1421_s9] sm:$0xff] }
 0x146   : > { %v556_v38 = vpack.c.bf16 %v551_v36, %v550_v37 }
 0x148   : > { %579 = vmatpush.bf16.msra.mxu2 %v556_v38 }
 0x14c   : > { %580 = vmatpush.bf16.msra.mxu2 %v533_v29  ;;  %v642_v29 = vld [vmem:[%s1418_s6 + $0x8] sm:$0xff] }
 0x150   : > { %581 = vmatpush.bf16.msra.mxu2 %v470_v26  ;;  %v681_v26 = vld [vmem:[%s1419_s7] sm:$0xff] }
 0x153   : > { %987 = vmatmul.msk.bf16.vlgmr.msra.gmra.mxu2 %vm567_vm0, %v1009_v40 }
 0x154   : > { %732 = vmatpush.bf16.msrb.mxu2 %v1247_v0 }
 0x158   : > { %733 = vmatpush.bf16.msrb.mxu2 %v1253_v1 }
 0x15c   : > { %734 = vmatpush.bf16.msrb.mxu2 %v1261_v2 }
 0x160   : > { %735 = vmatpush.bf16.msrb.mxu2 %v1269_v3 }
 0x163   : > { %988 = vmatmul.msk.bf16.gmra.mxu2 %vm567_vm0, %v1010_v41 }
 0x164   : > { %736 = vmatpush.bf16.msrb.mxu2 %v1293_v10 }
 0x168   : > { %737 = vmatpush.bf16.msrb.mxu2 %v1003_v15 }
 0x16c   : > { %738 = vmatpush.bf16.msrb.mxu2 %v1002_v20 }
 0x170   : > { %739 = vmatpush.bf16.msrb.mxu2 %v1001_v25 }
 0x1d6   : > { %v583_v43 = vpop.f32.mrf.mxu2 }
 0x1d7   : > { %v605_v44 = vadd.f32 %v598_v42, %v583_v43 }
 0x1d9   : > { %609 = vadd.xlane.f32.xlu1 %v605_v44 }
 0x1de   : > { %v585_v46 = vpop.f32.mrf.mxu2 }
 0x1df   : > { %v606_v47 = vadd.f32 %v603_v45, %v585_v46 }
 0x1e1   : > { %611 = vadd.xlane.f32.xlu1 %v606_v47 }
 0x1e6   : > { %v588_v48 = vpop.f32.mrf.mxu2 }
 0x1e7   : > { %v607_v49 = vadd.f32 %v598_v42, %v588_v48 }
 0x1e9   : > { %613 = vadd.xlane.f32.xlu2 %v607_v49 }
 0x1ee   : > { %v590_v50 = vpop.f32.mrf.mxu2 }
 0x1ef   : > { %v608_v51 = vadd.f32 %v603_v45, %v590_v50  ;;  %v702_v45 = vld [vmem:[%s431_s18 + $0x8] sm:$0xff] }
 0x1f1   : > { %615 = vadd.xlane.f32.xlu2 %v608_v51 }
 0x24c   : > { %v610_v52 = vpop.xlane.xlu1 %609 }
 0x254   : > { %v612_v60 = vpop.xlane.xlu1 %611 }
 0x25c   : > { %v614_v53 = vpop.xlane.xlu2 %613 }
 0x25d   : > { %v617_v54 = vadd.f32 %v614_v53, %v610_v52 }
 0x25f   : > { %v619_v55 = vmul.f32 0.00390625, %v617_v54 }
 0x261   : > { %v621_v56 = vsub.f32 %v605_v44, %v619_v55  ;;  %v1342_v57 = vsub.f32 %v607_v49, %v619_v55  ;;  %v701_v44 = vld [vmem:[%s431_s18] sm:$0xff]  ;;  %v704_v55 = vld [vmem:[%s431_s18 + $0x18] sm:$0xff] }
 0x263   : > { %v625_v58 = vmul.f32 %v621_v56, %v621_v56  ;;  %v627_v59 = vmul.f32 %v1342_v57, %v1342_v57 }
 0x264   : > { %v616_v61 = vpop.xlane.xlu2 %615 }
 0x265   : > { %v618_v62 = vadd.f32 %v616_v61, %v612_v60  ;;  %629 = vadd.xlane.f32.xlu0 %v625_v58  ;;  %633 = vadd.xlane.f32.xlu2 %v627_v59  ;;  %v703_v58 = vld [vmem:[%s431_s18 + $0x10] sm:$0xff] }
 0x267   : > { %v620_v63 = vmul.f32 0.00390625, %v618_v62 }
 0x269   : > { %v622_v0 = vsub.f32 %v606_v47, %v620_v63  ;;  %v1346_v2 = vsub.f32 %v608_v51, %v620_v63 }
 0x26b   : > { %v626_v1 = vmul.f32 %v622_v0, %v622_v0  ;;  %v628_v3 = vmul.f32 %v1346_v2, %v1346_v2 }
 0x26d   : > { %631 = vadd.xlane.f32.xlu1 %v626_v1 }
 0x275   : > { %635 = vadd.xlane.f32.xlu1 %v628_v3 }
 0x2d8   : > { %v630_v4 = vpop.xlane.xlu0 %629  ;;  %v634_v5 = vpop.xlane.xlu2 %633 }
 0x2d9   : > { %v637_v6 = vadd.f32 %v634_v5, %v630_v4 }
 0x2db   : > { %v639_v7 = vmul.f32 0.00390625, %v637_v6 }
 0x2dd   : > { %v643_v8 = vadd.f32 1e-05, %v639_v7 }
 0x2df   : > { %1058 = vrsqrt.f32 %v643_v8  ;;  %vm651_vm2 = vweird.f32 %v643_v8 }
 0x2e0   : > { %v632_v9 = vpop.xlane.xlu1 %631 }
 0x2e5   : > { %v1059_v10 = vpop.eup %1058 }
 0x2e6   : > { %v646_v11 = vmul.f32 %v1059_v10, %v643_v8  ;;  %vm652_vm1 = vweird.f32 %v1059_v10 }
 0x2e7   : > { %vm653_vm3 = vmor %vm651_vm2, %vm652_vm1 }
 0x2e8   : > { %v647_v12 = vmul.f32 %v1059_v10, %v646_v11  ;;  %v636_v13 = vpop.xlane.xlu1 %635 }
 0x2e9   : > { %v638_v14 = vadd.f32 %v636_v13, %v632_v9 }
 0x2ea   : > { %v648_v15 = vmul.f32 0.5, %v647_v12 }
 0x2eb   : > { %v640_v16 = vmul.f32 0.00390625, %v638_v14 }
 0x2ec   : > { %v649_v17 = vsub.f32 1.5, %v648_v15 }
 0x2ed   : > { %v644_v18 = vadd.f32 1e-05, %v640_v16 }
 0x2ee   : > { %v650_v20 = vmul.f32 %v1059_v10, %v649_v17  ;;  %v1011_v17 = vld [vmem:[%s1420_s8] sm:$0xff] }
 0x2ef   : > { %1060 = vrsqrt.f32 %v644_v18  ;;  %vm661_vm5 = vweird.f32 %v644_v18 }
 0x2f0   : > { %v654_v21 = vsel %vm653_vm3, %v1059_v10, %v650_v20 }
 0x2f1   : > { %v665_v22 = vmul.f32 %v654_v21, %v641_v19 }
 0x2f3   : > { %669 = vperm.xlu2 %1056, %v665_v22  }
 0x2f5   : > { %v1061_v23 = vpop.eup %1060 }
 0x2f6   : > { %v656_v24 = vmul.f32 %v1061_v23, %v644_v18  ;;  %vm662_vm4 = vweird.f32 %v1061_v23 }
 0x2f7   : > { %vm663_vm6 = vmor %vm661_vm5, %vm662_vm4 }
 0x2f8   : > { %v657_v25 = vmul.f32 %v1061_v23, %v656_v24 }
 0x2fa   : > { %v658_v27 = vmul.f32 0.5, %v657_v25 }
 0x2fb   : > { %685 = vperm.xlu2 %1056, %v681_v26  }
 0x2fc   : > { %v659_v28 = vsub.f32 1.5, %v658_v27 }
 0x2fe   : > { %v660_v30 = vmul.f32 %v1061_v23, %v659_v28 }
 0x300   : > { %v664_v31 = vsel %vm663_vm6, %v1061_v23, %v660_v30 }
 0x301   : > { %v666_v33 = vmul.f32 %v664_v31, %v642_v29 }
 0x303   : > { %674 = vperm.xlu1 %1057, %v666_v33   ;;  %690 = vperm.xlu2 %1056, %v682_v32  }
 0x30b   : > { %789 = vperm.xlu1 %1057, %v786_v34  }
 0x34d   : > { %v670_v35 = vpop.permute.xlu2 %669 }
 0x34e   : > { %v677_v37 = vmul.f32 %v670_v35, %v621_v56  ;;  %v679_v51 = vmul.f32 %v670_v35, %v1342_v57 }
 0x355   : > { %v686_v36 = vpop.permute.xlu2 %685 }
 0x356   : > { %v693_v38 = vadd.f32 %v686_v36, %v677_v37  ;;  %v695_v53 = vadd.f32 %v686_v36, %v679_v51 }
 0x358   : > { %v697_v42 = vmax.f32 %v693_v38, 0.0  ;;  %v699_v56 = vmax.f32 %v695_v53, 0.0 }
 0x35a   : > { %v705_v47 = vmul.f32 %v701_v44, %v697_v42  ;;  %v707_v60 = vmul.f32 %v703_v58, %v699_v56 }
 0x35d   : > { %v691_v41 = vpop.permute.xlu2 %690 }
 0x375   : > { %v675_v39 = vpop.permute.xlu1 %674 }
 0x376   : > { %v678_v40 = vmul.f32 %v675_v39, %v622_v0  ;;  %v680_v49 = vmul.f32 %v675_v39, %v1346_v2 }
 0x378   : > { %v694_v43 = vadd.f32 %v691_v41, %v678_v40  ;;  %v696_v52 = vadd.f32 %v691_v41, %v680_v49  ;;  %v810_v41 = vld [vmem:[%s1422_s10] sm:$0xff] }
 0x37a   : > { %v698_v46 = vmax.f32 %v694_v43, 0.0  ;;  %v700_v54 = vmax.f32 %v696_v52, 0.0 }
 0x37c   : > { %v706_v48 = vmul.f32 %v702_v45, %v698_v46  ;;  %v708_v59 = vmul.f32 %v704_v55, %v700_v54  ;;  %v830_v45 = vld [vmem:[%s1423_s11] sm:$0xff] }
 0x37d   : > { %v790_v18 = vpop.permute.xlu1 %789 }
 0x37e   : > { %v709_v50 = vpack.c.bf16 %v706_v48, %v705_v47  ;;  %v710_v61 = vpack.c.bf16 %v708_v59, %v707_v60 }
 0x380   : > { %719 = vmatmul.bf16.vlgmr.msra.gmra.mxu3 %v709_v50 }
 0x390   : > { %724 = vmatmul.bf16.gmra.mxu3 %v710_v61 }
 0x403   : > { %v720_v62 = vpop.f32.mrf.mxu3 }
 0x40b   : > { %v722_v63 = vpop.f32.mrf.mxu3 }
 0x40c   : > { %v730_v0 = vpack.c.bf16 %v722_v63, %v720_v62 }
 0x40e   : > { %740 = vmatmul.bf16.vlgmr.msrb.gmra.mxu2 %v730_v0 }
 0x413   : > { %v725_v1 = vpop.f32.mrf.mxu3 }
 0x41b   : > { %v727_v2 = vpop.f32.mrf.mxu3 }
 0x41c   : > { %v731_v3 = vpack.c.bf16 %v727_v2, %v725_v1 }
 0x41e   : > { %745 = vmatmul.bf16.gmra.mxu2 %v731_v3 }
 0x491   : > { %v741_v4 = vpop.f32.mrf.mxu2 }
 0x492   : > { %v751_v10 = vmul.f32 2.0, %v741_v4 }
 0x494   : > { %v755_v15 = vsub.f32 %v751_v10, %v705_v47 }
 0x499   : > { %v743_v57 = vpop.f32.mrf.mxu2 }
 0x49a   : > { %v752_v8 = vmul.f32 2.0, %v743_v57 }
 0x49c   : > { %v756_v13 = vsub.f32 %v752_v8, %v706_v48 }
 0x49e   : > { %v761_v16 = vpack.c.bf16 %v756_v13, %v755_v15 }
 0x4a1   : > { %v746_v5 = vpop.f32.mrf.mxu2 }
 0x4a2   : > { %v753_v6 = vmul.f32 2.0, %v746_v5 }
 0x4a4   : > { %v757_v11 = vsub.f32 %v753_v6, %v707_v60 }
 0x4a9   : > { %v748_v7 = vpop.f32.mrf.mxu2 }
 0x4aa   : > { %v754_v9 = vmul.f32 2.0, %v748_v7 }
 0x4ac   : > { %v758_v12 = vsub.f32 %v754_v9, %v708_v59 }
 0x4ae   : > { %v762_v14 = vpack.c.bf16 %v758_v12, %v757_v11 }
 0x4b0   : > { %774 = vmatpush.bf16.msrb.mxu0 %v762_v14 }
 0x4b4   : > { %775 = vmatpush.bf16.msrb.mxu0 %v761_v16 }
 0x4b8   : > { %776 = vmatpush.bf16.msrb.mxu0 %v731_v3 }
 0x4bc   : > { %777 = vmatpush.bf16.msrb.mxu0 %v730_v0 }
 0x4c0   : > { %778 = vmatpush.bf16.msrb.mxu0 %v710_v61 }
 0x4c4   : > { %779 = vmatpush.bf16.msrb.mxu0 %v709_v50 }
 0x4c7   : > { %993 = vmatmul.msk.bf16.vlgmr.msrb.gmra.mxu0 %vm768_vm7, %v1011_v17 }
 0x544   : > { %v781_v19 = vpop.f32.mrf.mxu0 }
 0x545   : > { %v792_v20 = vadd.f32 %v790_v18, %v781_v19 }
 0x547   : > { %794 = vadd.xlane.f32.xlu0 %v792_v20 }
 0x54c   : > { %v783_v21 = vpop.f32.mrf.mxu0 }
 0x54d   : > { %v793_v22 = vadd.f32 %v790_v18, %v783_v21 }
 0x54f   : > { %796 = vadd.xlane.f32.xlu2 %v793_v22 }
 0x5ba   : > { %v795_v23 = vpop.xlane.xlu0 %794 }
 0x5c2   : > { %v797_v24 = vpop.xlane.xlu2 %796 }
 0x5c3   : > { %v798_v25 = vadd.f32 %v797_v24, %v795_v23 }
 0x5c5   : > { %v799_v26 = vmul.f32 0.00390625, %v798_v25 }
 0x5c7   : > { %v800_v27 = vsub.f32 %v792_v20, %v799_v26  ;;  %v801_v28 = vsub.f32 %v793_v22, %v799_v26 }
 0x5c9   : > { %v803_v29 = vmul.f32 %v801_v28, %v801_v28  ;;  %v802_v30 = vmul.f32 %v800_v27, %v800_v27 }
 0x5cb   : > { %806 = vadd.xlane.f32.xlu0 %v803_v29  ;;  %804 = vadd.xlane.f32.xlu1 %v802_v30 }
 0x63e   : > { %v807_v31 = vpop.xlane.xlu0 %806  ;;  %v805_v32 = vpop.xlane.xlu1 %804 }
 0x63f   : > { %v808_v33 = vadd.f32 %v807_v31, %v805_v32 }
 0x641   : > { %v809_v34 = vmul.f32 0.00390625, %v808_v33 }
 0x643   : > { %v811_v35 = vadd.f32 1e-05, %v809_v34 }
 0x645   : > { %1062 = vrsqrt.f32 %v811_v35  ;;  %vm818_vm9 = vweird.f32 %v811_v35 }
 0x64b   : > { %v1063_v36 = vpop.eup %1062 }
 0x64c   : > { %v813_v37 = vmul.f32 %v1063_v36, %v811_v35  ;;  %vm819_vm8 = vweird.f32 %v1063_v36 }
 0x64d   : > { %vm820_vm10 = vmor %vm818_vm9, %vm819_vm8 }
 0x64e   : > { %v814_v38 = vmul.f32 %v1063_v36, %v813_v37 }
 0x650   : > { %v815_v39 = vmul.f32 0.5, %v814_v38 }
 0x652   : > { %v816_v40 = vsub.f32 1.5, %v815_v39 }
 0x654   : > { %v817_v42 = vmul.f32 %v1063_v36, %v816_v40 }
 0x656   : > { %v821_v43 = vsel %vm820_vm10, %v1063_v36, %v817_v42 }
 0x657   : > { %v822_v44 = vmul.f32 %v821_v43, %v810_v41 }
 0x659   : > { %825 = vperm.xlu0 %1055, %v822_v44  }
 0x661   : > { %833 = vperm.xlu0 %1055, %v830_v45  }
 0x6cb   : > { %v826_v46 = vpop.permute.xlu0 %825 }
 0x6cc   : > { %v828_v47 = vmul.f32 %v826_v46, %v800_v27  ;;  %v829_v48 = vmul.f32 %v826_v46, %v801_v28 }
 0x6d3   : > { %v834_v49 = vpop.permute.xlu0 %833 }
 0x6d4   : > { %v836_v50 = vadd.f32 %v834_v49, %v828_v47  ;;  %v837_v51 = vadd.f32 %v834_v49, %v829_v48 }
 0x6d6   : > { %v838_v52 = vmax.f32 %v836_v50, 0.0  ;;  %v839_v53 = vmax.f32 %v837_v51, 0.0 }
 0x6d8   : > { %840 = vst [vmem:[%s421_s15] sm:$0xff] %v838_v52 }
 0x6d9   : > { %841 = vst [vmem:[%s421_s15 + $0x8] sm:$0xff] %v839_v53 }
 0x6da   : > { %1091 = shalt.err (!%p1088_p3)
}
 0x6db   : > { %s1129_s20 = smov 128   ;;  %s1130_s15 = smov 8  }
 0x6dc   : > { %1013 = dma.vmem_to_hbm [thread:$0]  (%p1234_p5), %s856_s16, 256, %s858_s30, %s843_s25, %s1129_s20, %s1129_s20, %s1130_s15  }
 0x6dd PF: > { %p1019_p4 = scmp.ge.s32.totalorder %s1126_s24, 2  ;;  %s872_s28 = sand.u32 1, %s1114_s21  }
 0x6de   : > { %s873_s29 = scalar_lea.sflag [#allocation3], %s872_s28 }
 0x6df   : > { %p1016_p7 = pnand %p1019_p4, %p1238_p6 }
 0x6e1   : > { %p1017_p8 = pneg %p1016_p7 }
 0x6e3   : > { %1109 = dma.done.wait (%p1017_p8), %s873_s29, 256  }
 0x6e4   : > { %1111 = vsyncadd (%p1017_p8), %s873_s29, 4294967040  ;;  %s1430_s17 = sld [smem:[#allocation5_spill]]  ;;  %p22_p9 = scmp.ge.s32.totalorder %s1221_s27, 4  }
 0x6e5   : > { %s1431_s23 = sld [smem:[#allocation6_spill]]  ;;  %s1432_s21 = smov %s1118_s22 }
 0x6e6   : > { %s1434_s24 = smov %s1221_s27  ;;  %24 = sbr.rel (!%p22_p9) target bundleno = 3 (0x3), region = 109 }
 0x6ea   : > { %s1433_s22 = smov %s1430_s17 }
 0x6eb   :  { %879 = vsyncpa [#allocation3], 1 }
 0x6ec   :  { %881 = vsyncpa [#allocation3 + $0x1], 1 }

</bundles_post_ra>
